<compile_context>
chip_gen: v7x
topology: tpu7x:2x2x1
jax: 0.10.0
libtpu: 0.0.40
codegen_flags: <defaults>
</compile_context>

<pallas_src>
import jax
import jax.numpy as jnp
from jax.experimental import pallas as pl
from jax.experimental.pallas import tpu as pltpu


# ----------------------------------------------------------------------------
# Host-side (hoisted) constant builders
# ----------------------------------------------------------------------------
def interp_matrix(l_in, l_out, dtype=jnp.float32):
    """F.interpolate(mode='linear', align_corners=True) as an (l_out, l_in) matrix."""
    pos = jnp.arange(l_out, dtype=jnp.float32) * (l_in - 1) / (l_out - 1)
    lo = jnp.clip(jnp.floor(pos).astype(jnp.int32), 0, l_in - 2)
    w = pos - lo.astype(jnp.float32)
    oh_lo = jax.nn.one_hot(lo, l_in, dtype=jnp.float32)
    oh_hi = jax.nn.one_hot(lo + 1, l_in, dtype=jnp.float32)
    return ((1.0 - w)[:, None] * oh_lo + w[:, None] * oh_hi).astype(dtype)


def _tap_weights(w):
    """(Co, Ci, K) torch conv weight -> list of K (Ci, Co) tap matrices."""
    return [jnp.transpose(w[:, :, k]).astype(jnp.float32) for k in range(w.shape[2])]


def _place_taps(taps, positions, n_blocks):
    """Merged (n_blocks*Ci, Co) weight with the taps placed at the given slots."""
    ci, co = taps[0].shape
    blocks = [jnp.zeros((ci, co), jnp.float32)] * n_blocks
    for tap, p in zip(taps, positions):
        blocks[p] = tap
    return jnp.concatenate(blocks, axis=0)


def prepare_encoder(params, L, out_len=30, compute_dtype=jnp.bfloat16):
    """One-time weight preprocessing (merged tap weights, interp matrix).

    conv1 (K=4,s=2,p=1): quad-grouped input, separate merged (12*Ci, C1)
      weights for even/odd output rows (result is pair-packed for conv2).
    conv2 (K=4,s=2,p=1): merged (6*C1, Ch) weight over [prev|cur|next] pairs.
    conv3 / residual convs (K=3,s=1,p=1): merged (3*C, Co) weights.
    Matmul operands stored in `compute_dtype` (bf16 default); biases stay f32.
    """
    assert L % 4 == 0 and L >= 8, "fast conv path needs L % 4 == 0 and L >= 8"
    # TODO(synk): support lengths that are not multiples of 4 (edge handling).
    L2 = L // 4
    out_pad = -(-out_len // 8) * 8          # pad interp rows to sublane multiple

    w1, b1 = params['conv1']
    w2, b2 = params['conv2']
    w3, b3 = params['conv3']
    wp, bp = params['pre_vq']

    t1, t2, t3 = _tap_weights(w1), _tap_weights(w2), _tap_weights(w3)

    wa = jnp.stack([_place_taps(_tap_weights(wa_i), (0, 1, 2), 3)
                    for wa_i, _ in params['res']], axis=0)        # (R, 3*Ch, Crh)
    wb = jnp.stack([jnp.transpose(wb_i[:, :, 0])
                    for _, wb_i in params['res']], axis=0)        # (R, Crh, Ch)

    m = interp_matrix(L2, out_len)                                # (out_len, L2)
    m_pad = jnp.zeros((out_pad, L2), jnp.float32).at[:out_len].set(m)

    cd, f32 = compute_dtype, jnp.float32
    return {
        'w1e': _place_taps(t1, (3, 4, 5, 6), 12).astype(cd),      # even out rows
        'w1o': _place_taps(t1, (5, 6, 7, 8), 12).astype(cd),      # odd out rows
        'b1': b1.reshape(1, -1).astype(f32),
        'w2': _place_taps(t2, (1, 2, 3, 4), 6).astype(cd),
        'b2': b2.reshape(1, -1).astype(f32),
        'w3': _place_taps(t3, (0, 1, 2), 3).astype(cd),
        'b3': b3.reshape(1, -1).astype(f32),
        'wa': wa.astype(cd), 'wb': wb.astype(cd),
        'wp': jnp.transpose(wp[:, :, 0]).astype(cd),
        'bp': bp.reshape(1, -1).astype(f32),
        'm': m_pad.astype(cd),                                    # (out_pad, L2)
    }


# ----------------------------------------------------------------------------
# Fused forward (single pallas_call)
# ----------------------------------------------------------------------------
def encoder_forward(prep, inputs, out_len=30, batch_tiles=1):
    """Fused Encoder forward. inputs: (B, L, C_in) channels-last.

    Returns (out, before): out (B, out_len, E), before (B, L//4, E)
    (== PyTorch outputs permuted to channels-last).

    batch_tiles > 1 splits the (zero-padded) batch across grid steps marked
    "parallel" (useful on v7x, 2 TensorCores); the default folds the whole
    batch into one block for minimal per-step overhead.
    """
    B, L, Ci = inputs.shape
    assert L % 4 == 0 and L >= 8
    L2 = L // 4
    R = prep['wa'].shape[0]
    E = prep['wp'].shape[1]
    out_pad = prep['m'].shape[0]
    assert prep['m'].shape[1] == L2, "prep was built for a different length"
    assert prep['w1e'].shape[0] == 12 * Ci

    Bt = -(-B // batch_tiles)               # batch elements per grid step
    B_pad = Bt * batch_tiles
    N = Bt * L2                             # activation rows per grid step

    # Quad-grouped, row-major input: row (b*L2 + j) holds x[b, 4j:4j+4, :].
    xq = inputs.reshape(B * L2, 4 * Ci)
    if B_pad != B:
        xq = jnp.concatenate(
            [xq, jnp.zeros(((B_pad - B) * L2, 4 * Ci), xq.dtype)], axis=0)

    # Row masks marking first/last position of each batch item in a tile
    # (implement the conv zero padding for the shifted tap columns).
    pos = jnp.arange(N, dtype=jnp.int32) % L2
    nf = (pos != 0).astype(jnp.float32)[:, None]         # not first row of item
    nl = (pos != L2 - 1).astype(jnp.float32)[:, None]    # not last row of item

    names = ('w1e', 'w1o', 'b1', 'w2', 'b2', 'w3', 'b3',
             'wa', 'wb', 'wp', 'bp', 'm')
    weights = [prep[n] for n in names]

    def kernel(x_ref, nf_ref, nl_ref, w1e_ref, w1o_ref, b1_ref, w2_ref, b2_ref,
               w3_ref, b3_ref, wa_ref, wb_ref, wp_ref, bp_ref, m_ref,
               out_ref, before_ref):
        f32 = jnp.float32
        nf_m = nf_ref[...]
        nl_m = nl_ref[...]

        def taps3(x):
            """[x[t-1] | x[t] | x[t+1]] per row, zero-padded at item edges."""
            zero = jnp.zeros((1, x.shape[1]), x.dtype)
            down = jnp.concatenate([zero, x[:-1, :]], axis=0) * nf_m
            up = jnp.concatenate([x[1:, :], zero], axis=0) * nl_m
            return jnp.concatenate([down, x, up], axis=-1)

        def mm(a, w, bias=None):
            y = jnp.dot(a.astype(w.dtype), w, preferred_element_type=f32)
            return y if bias is None else y + bias

        x = x_ref[...].astype(f32)                        # (N, 4*Ci)

        # conv1 (K=4, s=2, p=1) + ReLU: even/odd output rows, pair-packed.
        cols1 = taps3(x)                                  # (N, 12*Ci)
        h_even = jnp.maximum(mm(cols1, w1e_ref[...], b1_ref[...]), 0.0)
        h_odd = jnp.maximum(mm(cols1, w1o_ref[...], b1_ref[...]), 0.0)
        hp = jnp.concatenate([h_even, h_odd], axis=-1)    # (N, 2*C1)

        # conv2 (K=4, s=2, p=1) + ReLU
        h = jnp.maximum(mm(taps3(hp), w2_ref[...], b2_ref[...]), 0.0)  # (N, Ch)

        # conv3 (K=3, s=1, p=1)
        h = mm(taps3(h), w3_ref[...], b3_ref[...])

        # Residual stack: x + Conv1x1(ReLU(Conv3(ReLU(x)))); final ReLU.
        # TODO(synk): switch to lax.fori_loop for large residual stacks.
        for i in range(R):
            a = jnp.maximum(mm(taps3(jnp.maximum(h, 0.0)), wa_ref[i]), 0.0)
            h = h + mm(a, wb_ref[i])
        h = jnp.maximum(h, 0.0)

        # pre-VQ 1x1 conv (with bias)
        before = mm(h, wp_ref[...], bp_ref[...])          # (N, E)
        before_ref[...] = before.astype(before_ref.dtype)

        # Fused F.interpolate(size=30, linear, align_corners=True):
        # per batch item, (out_pad, L2) @ (L2, E).
        # TODO(synk): for large folded batches use one block-diagonal matmul.
        m_w = m_ref[...]
        for b in range(Bt):
            blk = before[b * L2:(b + 1) * L2, :]
            out_ref[pl.ds(b * out_pad, out_pad), :] = jnp.dot(
                m_w, blk.astype(m_w.dtype),
                preferred_element_type=f32).astype(out_ref.dtype)

    def full_spec(a):
        return pl.BlockSpec(tuple(a.shape), lambda i, nd=a.ndim: (0,) * nd)

    # Explicit VMEM budget: every operand is double-buffered by the pipeline.
    const_bytes = sum(a.size * a.dtype.itemsize for a in weights)
    const_bytes += (nf.size + nl.size) * 4
    io_bytes = (N * 4 * Ci + Bt * out_pad * E + N * E) * inputs.dtype.itemsize
    vmem_limit = int(min(48 << 20, 2 * (const_bytes + io_bytes) + (16 << 20)))

    out2d, before2d = pl.pallas_call(
        kernel,
        out_shape=(jax.ShapeDtypeStruct((B_pad * out_pad, E), inputs.dtype),
                   jax.ShapeDtypeStruct((B_pad * L2, E), inputs.dtype)),
        grid=(batch_tiles,),
        in_specs=([pl.BlockSpec((N, 4 * Ci), lambda i: (i, 0)),
                   full_spec(nf), full_spec(nl)]
                  + [full_spec(a) for a in weights]),
        out_specs=(pl.BlockSpec((Bt * out_pad, E), lambda i: (i, 0)),
                   pl.BlockSpec((N, E), lambda i: (i, 0))),
        compiler_params=pltpu.CompilerParams(
            dimension_semantics=("parallel",),
            vmem_limit_bytes=vmem_limit),
    )(xq, nf, nl, *weights)

    out = out2d.reshape(B_pad, out_pad, E)[:B, :out_len]
    before = before2d.reshape(B_pad, L2, E)[:B]
    return out, before


# ----------------------------------------------------------------------------
# Encoder parameters (deterministic, torch-like uniform init)
# ----------------------------------------------------------------------------
def _conv_init(key, co, ci, k, bias=True):
    kw, kb = jax.random.split(key)
    bound = 1.0 / jnp.sqrt(jnp.float32(ci * k))
    w = jax.random.uniform(kw, (co, ci, k), jnp.float32, -bound, bound)
    b = jax.random.uniform(kb, (co,), jnp.float32, -bound, bound) if bias else None
    return w, b


def init_params(key, in_channels, num_hiddens, num_residual_layers,
                num_residual_hiddens, embedding_dim):
    keys = jax.random.split(key, 4 + 2 * num_residual_layers)
    params = {
        'conv1': _conv_init(keys[0], num_hiddens // 2, in_channels, 4),
        'conv2': _conv_init(keys[1], num_hiddens, num_hiddens // 2, 4),
        'conv3': _conv_init(keys[2], num_hiddens, num_hiddens, 3),
        'res': [],
    }
    for i in range(num_residual_layers):
        wa, _ = _conv_init(keys[3 + 2 * i], num_residual_hiddens, num_hiddens, 3,
                           bias=False)
        wb, _ = _conv_init(keys[4 + 2 * i], num_hiddens, num_residual_hiddens, 1,
                           bias=False)
        params['res'].append((wa, wb))
    params['pre_vq'] = _conv_init(keys[3 + 2 * num_residual_layers],
                                  embedding_dim, num_hiddens, 1)
    return params


# ----------------------------------------------------------------------------
# Pure-JAX reference (NCW, matches PyTorch semantics) for verification
# ----------------------------------------------------------------------------
def _conv1d_ref(x_ncw, w, b, stride, padding):
    out = jax.lax.conv_general_dilated(
        x_ncw, w, window_strides=(stride,), padding=[(padding, padding)],
        dimension_numbers=('NCH', 'OIH', 'NCH'))
    if b is not None:
        out = out + b[None, :, None]
    return out


def encoder_ref(params, inputs):
    x = jnp.transpose(inputs, (0, 2, 1))                  # NCW
    w, b = params['conv1']; x = jax.nn.relu(_conv1d_ref(x, w, b, 2, 1))
    w, b = params['conv2']; x = jax.nn.relu(_conv1d_ref(x, w, b, 2, 1))
    w, b = params['conv3']; x = _conv1d_ref(x, w, b, 1, 1)
    for wa, wb in params['res']:
        h = jax.nn.relu(_conv1d_ref(jax.nn.relu(x), wa, None, 1, 1))
        x = x + _conv1d_ref(h, wb, None, 1, 0)
    x = jax.nn.relu(x)
    w, b = params['pre_vq']; before = _conv1d_ref(x, w, b, 1, 0)
    M = interp_matrix(before.shape[-1], 30)
    out = jnp.einsum('oi,bci->bco', M, before)
    return out, before


if __name__ == "__main__":
    key = jax.random.PRNGKey(0)
    k_in, k_par = jax.random.split(key)

    B, L, C_in = 2, 16, 4
    num_hiddens, num_res_layers, num_res_hiddens, emb_dim = 32, 2, 8, 16

    inputs = jax.random.normal(k_in, (B, L, C_in), jnp.float32)
    params = init_params(k_par, C_in, num_hiddens, num_res_layers,
                         num_res_hiddens, emb_dim)

    out_r, before_r = encoder_ref(params, inputs)
    out_r = jnp.transpose(out_r, (0, 2, 1))               # channels-last
    before_r = jnp.transpose(before_r, (0, 2, 1))

    fwd = jax.jit(encoder_forward)

    # f32 matmul-input path (tighter check).
    prep_f32 = prepare_encoder(params, L, compute_dtype=jnp.float32)
    out32, before32 = jax.block_until_ready(fwd(prep_f32, inputs))
    assert out32.shape == (B, 30, emb_dim)
    assert before32.shape == (B, L // 4, emb_dim)
    assert jnp.allclose(out32, out_r, atol=1e-2, rtol=1e-2)
    assert jnp.allclose(before32, before_r, atol=1e-2, rtol=1e-2)

    # bf16 matmul-input path (default; f32 accumulation) -- looser check.
    prep_bf16 = prepare_encoder(params, L)
    out16, before16 = jax.block_until_ready(fwd(prep_bf16, inputs))
    assert jnp.allclose(out16, out_r, atol=5e-2, rtol=5e-2)
    assert jnp.allclose(before16, before_r, atol=5e-2, rtol=5e-2)

    print("KERNEL_OK")
</pallas_src>

<mosaic_0001>
module attributes {stable_mosaic.version = 11 : i64} {
  func.func @kernel(%arg0: i32, %arg1: memref<8x16xf32, #tpu.memory_space<vmem>>, %arg2: memref<8x1xf32, #tpu.memory_space<vmem>>, %arg3: memref<8x1xf32, #tpu.memory_space<vmem>>, %arg4: memref<48x16xf32, #tpu.memory_space<vmem>>, %arg5: memref<48x16xf32, #tpu.memory_space<vmem>>, %arg6: memref<1x16xf32, #tpu.memory_space<vmem>>, %arg7: memref<96x32xf32, #tpu.memory_space<vmem>>, %arg8: memref<1x32xf32, #tpu.memory_space<vmem>>, %arg9: memref<96x32xf32, #tpu.memory_space<vmem>>, %arg10: memref<1x32xf32, #tpu.memory_space<vmem>>, %arg11: memref<2x96x8xf32, #tpu.memory_space<vmem>>, %arg12: memref<2x8x32xf32, #tpu.memory_space<vmem>>, %arg13: memref<32x16xf32, #tpu.memory_space<vmem>>, %arg14: memref<1x16xf32, #tpu.memory_space<vmem>>, %arg15: memref<32x4xf32, #tpu.memory_space<vmem>>, %arg16: memref<64x16xf32, #tpu.memory_space<vmem>>, %arg17: memref<8x16xf32, #tpu.memory_space<vmem>>) attributes {dimension_semantics = [#tpu.dimension_semantics<parallel>], iteration_bounds = array<i64: 1>, scalar_prefetch = 0 : i64, scratch_operands = 0 : i64, tpu.core_type = #tpu.core_type<tc>, window_params = [{transform_indices = @transform_0, window_bounds = array<i64: 8, 16>}, {pipeline_mode = #tpu.pipeline_mode<synchronous>, transform_indices = @transform_1, window_bounds = array<i64: 8, 1>}, {pipeline_mode = #tpu.pipeline_mode<synchronous>, transform_indices = @transform_2, window_bounds = array<i64: 8, 1>}, {pipeline_mode = #tpu.pipeline_mode<synchronous>, transform_indices = @transform_3, window_bounds = array<i64: 48, 16>}, {pipeline_mode = #tpu.pipeline_mode<synchronous>, transform_indices = @transform_4, window_bounds = array<i64: 48, 16>}, {pipeline_mode = #tpu.pipeline_mode<synchronous>, transform_indices = @transform_5, window_bounds = array<i64: 1, 16>}, {pipeline_mode = #tpu.pipeline_mode<synchronous>, transform_indices = @transform_6, window_bounds = array<i64: 96, 32>}, {pipeline_mode = #tpu.pipeline_mode<synchronous>, transform_indices = @transform_7, window_bounds = array<i64: 1, 32>}, {pipeline_mode = #tpu.pipeline_mode<synchronous>, transform_indices = @transform_8, window_bounds = array<i64: 96, 32>}, {pipeline_mode = #tpu.pipeline_mode<synchronous>, transform_indices = @transform_9, window_bounds = array<i64: 1, 32>}, {pipeline_mode = #tpu.pipeline_mode<synchronous>, transform_indices = @transform_10, window_bounds = array<i64: 2, 96, 8>}, {pipeline_mode = #tpu.pipeline_mode<synchronous>, transform_indices = @transform_11, window_bounds = array<i64: 2, 8, 32>}, {pipeline_mode = #tpu.pipeline_mode<synchronous>, transform_indices = @transform_12, window_bounds = array<i64: 32, 16>}, {pipeline_mode = #tpu.pipeline_mode<synchronous>, transform_indices = @transform_13, window_bounds = array<i64: 1, 16>}, {pipeline_mode = #tpu.pipeline_mode<synchronous>, transform_indices = @transform_14, window_bounds = array<i64: 32, 4>}, {transform_indices = @transform_15, window_bounds = array<i64: 64, 16>}, {transform_indices = @transform_16, window_bounds = array<i64: 8, 16>}]} {
    %c0 = arith.constant 0 : index
    %c0_0 = arith.constant 0 : index
    %0 = vector.load %arg2[%c0, %c0_0] : memref<8x1xf32, #tpu.memory_space<vmem>>, vector<8x1xf32>
    %c0_1 = arith.constant 0 : index
    %c0_2 = arith.constant 0 : index
    %1 = vector.load %arg3[%c0_1, %c0_2] : memref<8x1xf32, #tpu.memory_space<vmem>>, vector<8x1xf32>
    %c0_3 = arith.constant 0 : index
    %c0_4 = arith.constant 0 : index
    %2 = vector.load %arg1[%c0_3, %c0_4] : memref<8x16xf32, #tpu.memory_space<vmem>>, vector<8x16xf32>
    %cst = arith.constant 0.000000e+00 : f32
    %3 = vector.broadcast %cst : f32 to vector<1x16xf32>
    %4 = vector.extract_strided_slice %2 {offsets = [0, 0], sizes = [7, 16], strides = [1, 1]} : vector<8x16xf32> to vector<7x16xf32>
    %5 = tpu.concatenate %3, %4 in 0 : vector<1x16xf32>, vector<7x16xf32> -> vector<8x16xf32>
    %6 = vector.broadcast %0 : vector<8x1xf32> to vector<8x16xf32>
    %7 = arith.mulf %5, %6 : vector<8x16xf32>
    %8 = vector.extract_strided_slice %2 {offsets = [1, 0], sizes = [7, 16], strides = [1, 1]} : vector<8x16xf32> to vector<7x16xf32>
    %9 = tpu.concatenate %8, %3 in 0 : vector<7x16xf32>, vector<1x16xf32> -> vector<8x16xf32>
    %10 = vector.broadcast %1 : vector<8x1xf32> to vector<8x16xf32>
    %11 = arith.mulf %9, %10 : vector<8x16xf32>
    %12 = tpu.concatenate %7, %2, %11 in 1 : vector<8x16xf32>, vector<8x16xf32>, vector<8x16xf32> -> vector<8x48xf32>
    %c0_5 = arith.constant 0 : index
    %c0_6 = arith.constant 0 : index
    %13 = vector.load %arg4[%c0_5, %c0_6] : memref<48x16xf32, #tpu.memory_space<vmem>>, vector<48x16xf32>
    %c0_7 = arith.constant 0 : index
    %c0_8 = arith.constant 0 : index
    %14 = vector.load %arg6[%c0_7, %c0_8] : memref<1x16xf32, #tpu.memory_space<vmem>>, vector<1x16xf32>
    %cst_9 = arith.constant dense<0.000000e+00> : vector<8x16xf32>
    %15 = tpu.matmul %12, %13, %cst_9 {dimension_numbers = #tpu.dot_dimension_numbers<[1], [0], [0], [1], [0, 0, 1, 1], [], []>} : vector<8x48xf32>, vector<48x16xf32>, vector<8x16xf32> -> vector<8x16xf32>
    %16 = vector.broadcast %14 : vector<1x16xf32> to vector<8x16xf32>
    %17 = arith.addf %15, %16 : vector<8x16xf32>
    %cst_10 = arith.constant 0.000000e+00 : f32
    %18 = vector.broadcast %cst_10 : f32 to vector<8x16xf32>
    %19 = arith.maximumf %17, %18 : vector<8x16xf32>
    %c0_11 = arith.constant 0 : index
    %c0_12 = arith.constant 0 : index
    %20 = vector.load %arg5[%c0_11, %c0_12] : memref<48x16xf32, #tpu.memory_space<vmem>>, vector<48x16xf32>
    %c0_13 = arith.constant 0 : index
    %c0_14 = arith.constant 0 : index
    %21 = vector.load %arg6[%c0_13, %c0_14] : memref<1x16xf32, #tpu.memory_space<vmem>>, vector<1x16xf32>
    %cst_15 = arith.constant dense<0.000000e+00> : vector<8x16xf32>
    %22 = tpu.matmul %12, %20, %cst_15 {dimension_numbers = #tpu.dot_dimension_numbers<[1], [0], [0], [1], [0, 0, 1, 1], [], []>} : vector<8x48xf32>, vector<48x16xf32>, vector<8x16xf32> -> vector<8x16xf32>
    %23 = vector.broadcast %21 : vector<1x16xf32> to vector<8x16xf32>
    %24 = arith.addf %22, %23 : vector<8x16xf32>
    %cst_16 = arith.constant 0.000000e+00 : f32
    %25 = vector.broadcast %cst_16 : f32 to vector<8x16xf32>
    %26 = arith.maximumf %24, %25 : vector<8x16xf32>
    %27 = tpu.concatenate %19, %26 in 1 : vector<8x16xf32>, vector<8x16xf32> -> vector<8x32xf32>
    %cst_17 = arith.constant 0.000000e+00 : f32
    %28 = vector.broadcast %cst_17 : f32 to vector<1x32xf32>
    %29 = vector.extract_strided_slice %27 {offsets = [0, 0], sizes = [7, 32], strides = [1, 1]} : vector<8x32xf32> to vector<7x32xf32>
    %30 = tpu.concatenate %28, %29 in 0 : vector<1x32xf32>, vector<7x32xf32> -> vector<8x32xf32>
    %31 = vector.broadcast %0 : vector<8x1xf32> to vector<8x32xf32>
    %32 = arith.mulf %30, %31 : vector<8x32xf32>
    %33 = vector.extract_strided_slice %27 {offsets = [1, 0], sizes = [7, 32], strides = [1, 1]} : vector<8x32xf32> to vector<7x32xf32>
    %34 = tpu.concatenate %33, %28 in 0 : vector<7x32xf32>, vector<1x32xf32> -> vector<8x32xf32>
    %35 = vector.broadcast %1 : vector<8x1xf32> to vector<8x32xf32>
    %36 = arith.mulf %34, %35 : vector<8x32xf32>
    %37 = tpu.concatenate %32, %27, %36 in 1 : vector<8x32xf32>, vector<8x32xf32>, vector<8x32xf32> -> vector<8x96xf32>
    %c0_18 = arith.constant 0 : index
    %c0_19 = arith.constant 0 : index
    %38 = vector.load %arg7[%c0_18, %c0_19] : memref<96x32xf32, #tpu.memory_space<vmem>>, vector<96x32xf32>
    %c0_20 = arith.constant 0 : index
    %c0_21 = arith.constant 0 : index
    %39 = vector.load %arg8[%c0_20, %c0_21] : memref<1x32xf32, #tpu.memory_space<vmem>>, vector<1x32xf32>
    %cst_22 = arith.constant dense<0.000000e+00> : vector<8x32xf32>
    %40 = tpu.matmul %37, %38, %cst_22 {dimension_numbers = #tpu.dot_dimension_numbers<[1], [0], [0], [1], [0, 0, 1, 1], [], []>} : vector<8x96xf32>, vector<96x32xf32>, vector<8x32xf32> -> vector<8x32xf32>
    %41 = vector.broadcast %39 : vector<1x32xf32> to vector<8x32xf32>
    %42 = arith.addf %40, %41 : vector<8x32xf32>
    %cst_23 = arith.constant 0.000000e+00 : f32
    %43 = vector.broadcast %cst_23 : f32 to vector<8x32xf32>
    %44 = arith.maximumf %42, %43 : vector<8x32xf32>
    %cst_24 = arith.constant 0.000000e+00 : f32
    %45 = vector.broadcast %cst_24 : f32 to vector<1x32xf32>
    %46 = vector.extract_strided_slice %44 {offsets = [0, 0], sizes = [7, 32], strides = [1, 1]} : vector<8x32xf32> to vector<7x32xf32>
    %47 = tpu.concatenate %45, %46 in 0 : vector<1x32xf32>, vector<7x32xf32> -> vector<8x32xf32>
    %48 = vector.broadcast %0 : vector<8x1xf32> to vector<8x32xf32>
    %49 = arith.mulf %47, %48 : vector<8x32xf32>
    %50 = vector.extract_strided_slice %44 {offsets = [1, 0], sizes = [7, 32], strides = [1, 1]} : vector<8x32xf32> to vector<7x32xf32>
    %51 = tpu.concatenate %50, %45 in 0 : vector<7x32xf32>, vector<1x32xf32> -> vector<8x32xf32>
    %52 = vector.broadcast %1 : vector<8x1xf32> to vector<8x32xf32>
    %53 = arith.mulf %51, %52 : vector<8x32xf32>
    %54 = tpu.concatenate %49, %44, %53 in 1 : vector<8x32xf32>, vector<8x32xf32>, vector<8x32xf32> -> vector<8x96xf32>
    %c0_25 = arith.constant 0 : index
    %c0_26 = arith.constant 0 : index
    %55 = vector.load %arg9[%c0_25, %c0_26] : memref<96x32xf32, #tpu.memory_space<vmem>>, vector<96x32xf32>
    %c0_27 = arith.constant 0 : index
    %c0_28 = arith.constant 0 : index
    %56 = vector.load %arg10[%c0_27, %c0_28] : memref<1x32xf32, #tpu.memory_space<vmem>>, vector<1x32xf32>
    %cst_29 = arith.constant dense<0.000000e+00> : vector<8x32xf32>
    %57 = tpu.matmul %54, %55, %cst_29 {dimension_numbers = #tpu.dot_dimension_numbers<[1], [0], [0], [1], [0, 0, 1, 1], [], []>} : vector<8x96xf32>, vector<96x32xf32>, vector<8x32xf32> -> vector<8x32xf32>
    %58 = vector.broadcast %56 : vector<1x32xf32> to vector<8x32xf32>
    %59 = arith.addf %57, %58 : vector<8x32xf32>
    %cst_30 = arith.constant 0.000000e+00 : f32
    %60 = vector.broadcast %cst_30 : f32 to vector<8x32xf32>
    %61 = arith.maximumf %59, %60 : vector<8x32xf32>
    %cst_31 = arith.constant 0.000000e+00 : f32
    %62 = vector.broadcast %cst_31 : f32 to vector<1x32xf32>
    %63 = vector.extract_strided_slice %61 {offsets = [0, 0], sizes = [7, 32], strides = [1, 1]} : vector<8x32xf32> to vector<7x32xf32>
    %64 = tpu.concatenate %62, %63 in 0 : vector<1x32xf32>, vector<7x32xf32> -> vector<8x32xf32>
    %65 = vector.broadcast %0 : vector<8x1xf32> to vector<8x32xf32>
    %66 = arith.mulf %64, %65 : vector<8x32xf32>
    %67 = vector.extract_strided_slice %61 {offsets = [1, 0], sizes = [7, 32], strides = [1, 1]} : vector<8x32xf32> to vector<7x32xf32>
    %68 = tpu.concatenate %67, %62 in 0 : vector<7x32xf32>, vector<1x32xf32> -> vector<8x32xf32>
    %69 = vector.broadcast %1 : vector<8x1xf32> to vector<8x32xf32>
    %70 = arith.mulf %68, %69 : vector<8x32xf32>
    %71 = tpu.concatenate %66, %61, %70 in 1 : vector<8x32xf32>, vector<8x32xf32>, vector<8x32xf32> -> vector<8x96xf32>
    %c0_32 = arith.constant 0 : index
    %c0_33 = arith.constant 0 : index
    %c0_34 = arith.constant 0 : index
    %72 = vector.load %arg11[%c0_32, %c0_33, %c0_34] : memref<2x96x8xf32, #tpu.memory_space<vmem>>, vector<1x96x8xf32>
    %73 = vector.shape_cast %72 : vector<1x96x8xf32> to vector<96x8xf32>
    %cst_35 = arith.constant dense<0.000000e+00> : vector<8x8xf32>
    %74 = tpu.matmul %71, %73, %cst_35 {dimension_numbers = #tpu.dot_dimension_numbers<[1], [0], [0], [1], [0, 0, 1, 1], [], []>} : vector<8x96xf32>, vector<96x8xf32>, vector<8x8xf32> -> vector<8x8xf32>
    %cst_36 = arith.constant 0.000000e+00 : f32
    %75 = vector.broadcast %cst_36 : f32 to vector<8x8xf32>
    %76 = arith.maximumf %74, %75 : vector<8x8xf32>
    %c0_37 = arith.constant 0 : index
    %c0_38 = arith.constant 0 : index
    %c0_39 = arith.constant 0 : index
    %77 = vector.load %arg12[%c0_37, %c0_38, %c0_39] : memref<2x8x32xf32, #tpu.memory_space<vmem>>, vector<1x8x32xf32>
    %78 = vector.shape_cast %77 : vector<1x8x32xf32> to vector<8x32xf32>
    %cst_40 = arith.constant dense<0.000000e+00> : vector<8x32xf32>
    %79 = tpu.matmul %76, %78, %cst_40 {dimension_numbers = #tpu.dot_dimension_numbers<[1], [0], [0], [1], [0, 0, 1, 1], [], []>} : vector<8x8xf32>, vector<8x32xf32>, vector<8x32xf32> -> vector<8x32xf32>
    %80 = arith.addf %59, %79 : vector<8x32xf32>
    %cst_41 = arith.constant 0.000000e+00 : f32
    %81 = vector.broadcast %cst_41 : f32 to vector<8x32xf32>
    %82 = arith.maximumf %80, %81 : vector<8x32xf32>
    %cst_42 = arith.constant 0.000000e+00 : f32
    %83 = vector.broadcast %cst_42 : f32 to vector<1x32xf32>
    %84 = vector.extract_strided_slice %82 {offsets = [0, 0], sizes = [7, 32], strides = [1, 1]} : vector<8x32xf32> to vector<7x32xf32>
    %85 = tpu.concatenate %83, %84 in 0 : vector<1x32xf32>, vector<7x32xf32> -> vector<8x32xf32>
    %86 = vector.broadcast %0 : vector<8x1xf32> to vector<8x32xf32>
    %87 = arith.mulf %85, %86 : vector<8x32xf32>
    %88 = vector.extract_strided_slice %82 {offsets = [1, 0], sizes = [7, 32], strides = [1, 1]} : vector<8x32xf32> to vector<7x32xf32>
    %89 = tpu.concatenate %88, %83 in 0 : vector<7x32xf32>, vector<1x32xf32> -> vector<8x32xf32>
    %90 = vector.broadcast %1 : vector<8x1xf32> to vector<8x32xf32>
    %91 = arith.mulf %89, %90 : vector<8x32xf32>
    %92 = tpu.concatenate %87, %82, %91 in 1 : vector<8x32xf32>, vector<8x32xf32>, vector<8x32xf32> -> vector<8x96xf32>
    %c1 = arith.constant 1 : index
    %c0_43 = arith.constant 0 : index
    %c0_44 = arith.constant 0 : index
    %93 = vector.load %arg11[%c1, %c0_43, %c0_44] : memref<2x96x8xf32, #tpu.memory_space<vmem>>, vector<1x96x8xf32>
    %94 = vector.shape_cast %93 : vector<1x96x8xf32> to vector<96x8xf32>
    %cst_45 = arith.constant dense<0.000000e+00> : vector<8x8xf32>
    %95 = tpu.matmul %92, %94, %cst_45 {dimension_numbers = #tpu.dot_dimension_numbers<[1], [0], [0], [1], [0, 0, 1, 1], [], []>} : vector<8x96xf32>, vector<96x8xf32>, vector<8x8xf32> -> vector<8x8xf32>
    %cst_46 = arith.constant 0.000000e+00 : f32
    %96 = vector.broadcast %cst_46 : f32 to vector<8x8xf32>
    %97 = arith.maximumf %95, %96 : vector<8x8xf32>
    %c1_47 = arith.constant 1 : index
    %c0_48 = arith.constant 0 : index
    %c0_49 = arith.constant 0 : index
    %98 = vector.load %arg12[%c1_47, %c0_48, %c0_49] : memref<2x8x32xf32, #tpu.memory_space<vmem>>, vector<1x8x32xf32>
    %99 = vector.shape_cast %98 : vector<1x8x32xf32> to vector<8x32xf32>
    %cst_50 = arith.constant dense<0.000000e+00> : vector<8x32xf32>
    %100 = tpu.matmul %97, %99, %cst_50 {dimension_numbers = #tpu.dot_dimension_numbers<[1], [0], [0], [1], [0, 0, 1, 1], [], []>} : vector<8x8xf32>, vector<8x32xf32>, vector<8x32xf32> -> vector<8x32xf32>
    %101 = arith.addf %80, %100 : vector<8x32xf32>
    %cst_51 = arith.constant 0.000000e+00 : f32
    %102 = vector.broadcast %cst_51 : f32 to vector<8x32xf32>
    %103 = arith.maximumf %101, %102 : vector<8x32xf32>
    %c0_52 = arith.constant 0 : index
    %c0_53 = arith.constant 0 : index
    %104 = vector.load %arg13[%c0_52, %c0_53] : memref<32x16xf32, #tpu.memory_space<vmem>>, vector<32x16xf32>
    %c0_54 = arith.constant 0 : index
    %c0_55 = arith.constant 0 : index
    %105 = vector.load %arg14[%c0_54, %c0_55] : memref<1x16xf32, #tpu.memory_space<vmem>>, vector<1x16xf32>
    %cst_56 = arith.constant dense<0.000000e+00> : vector<8x16xf32>
    %106 = tpu.matmul %103, %104, %cst_56 {dimension_numbers = #tpu.dot_dimension_numbers<[1], [0], [0], [1], [0, 0, 1, 1], [], []>} : vector<8x32xf32>, vector<32x16xf32>, vector<8x16xf32> -> vector<8x16xf32>
    %107 = vector.broadcast %105 : vector<1x16xf32> to vector<8x16xf32>
    %108 = arith.addf %106, %107 : vector<8x16xf32>
    %c0_57 = arith.constant 0 : index
    %c0_58 = arith.constant 0 : index
    %109 = vector.load %arg17[%c0_57, %c0_58] : memref<8x16xf32, #tpu.memory_space<vmem>>, vector<8x16xf32>
    tpu.vector_store %arg17[%c0_57, %c0_58], %108 {strides = array<i32>} : memref<8x16xf32, #tpu.memory_space<vmem>>, vector<8x16xf32>,
    %c0_59 = arith.constant 0 : index
    %c0_60 = arith.constant 0 : index
    %110 = vector.load %arg15[%c0_59, %c0_60] : memref<32x4xf32, #tpu.memory_space<vmem>>, vector<32x4xf32>
    %111 = vector.extract_strided_slice %108 {offsets = [0, 0], sizes = [4, 16], strides = [1, 1]} : vector<8x16xf32> to vector<4x16xf32>
    %cst_61 = arith.constant dense<0.000000e+00> : vector<32x16xf32>
    %112 = tpu.matmul %110, %111, %cst_61 {dimension_numbers = #tpu.dot_dimension_numbers<[1], [0], [0], [1], [0, 0, 1, 1], [], []>} : vector<32x4xf32>, vector<4x16xf32>, vector<32x16xf32> -> vector<32x16xf32>
    %c0_62 = arith.constant 0 : index
    %c0_63 = arith.constant 0 : index
    %113 = vector.load %arg16[%c0_62, %c0_63] : memref<64x16xf32, #tpu.memory_space<vmem>>, vector<32x16xf32>
    tpu.vector_store %arg16[%c0_62, %c0_63], %112 {strides = array<i32>} : memref<64x16xf32, #tpu.memory_space<vmem>>, vector<32x16xf32>,
    %114 = vector.extract_strided_slice %108 {offsets = [4, 0], sizes = [4, 16], strides = [1, 1]} : vector<8x16xf32> to vector<4x16xf32>
    %cst_64 = arith.constant dense<0.000000e+00> : vector<32x16xf32>
    %115 = tpu.matmul %110, %114, %cst_64 {dimension_numbers = #tpu.dot_dimension_numbers<[1], [0], [0], [1], [0, 0, 1, 1], [], []>} : vector<32x4xf32>, vector<4x16xf32>, vector<32x16xf32> -> vector<32x16xf32>
    %c32 = arith.constant 32 : index
    %c0_65 = arith.constant 0 : index
    %116 = vector.load %arg16[%c32, %c0_65] : memref<64x16xf32, #tpu.memory_space<vmem>>, vector<32x16xf32>
    tpu.vector_store %arg16[%c32, %c0_65], %115 {strides = array<i32>} : memref<64x16xf32, #tpu.memory_space<vmem>>, vector<32x16xf32>,
    return
  }
  func.func @transform_0(%arg0: i32) -> (i32, i32) {
    %c0_i32 = arith.constant 0 : i32
    %c0_i32_0 = arith.constant 0 : i32
    return %arg0, %c0_i32 : i32, i32
  }
  func.func @transform_1(%arg0: i32) -> (i32, i32) {
    %c0_i32 = arith.constant 0 : i32
    %c0_i32_0 = arith.constant 0 : i32
    %c0_i32_1 = arith.constant 0 : i32
    return %c0_i32, %c0_i32_0 : i32, i32
  }
  func.func @transform_2(%arg0: i32) -> (i32, i32) {
    %c0_i32 = arith.constant 0 : i32
    %c0_i32_0 = arith.constant 0 : i32
    %c0_i32_1 = arith.constant 0 : i32
    return %c0_i32, %c0_i32_0 : i32, i32
  }
  func.func @transform_3(%arg0: i32) -> (i32, i32) {
    %c0_i32 = arith.constant 0 : i32
    %c0_i32_0 = arith.constant 0 : i32
    %c0_i32_1 = arith.constant 0 : i32
    return %c0_i32, %c0_i32_0 : i32, i32
  }
  func.func @transform_4(%arg0: i32) -> (i32, i32) {
    %c0_i32 = arith.constant 0 : i32
    %c0_i32_0 = arith.constant 0 : i32
    %c0_i32_1 = arith.constant 0 : i32
    return %c0_i32, %c0_i32_0 : i32, i32
  }
  func.func @transform_5(%arg0: i32) -> (i32, i32) {
    %c0_i32 = arith.constant 0 : i32
    %c0_i32_0 = arith.constant 0 : i32
    %c0_i32_1 = arith.constant 0 : i32
    return %c0_i32, %c0_i32_0 : i32, i32
  }
  func.func @transform_6(%arg0: i32) -> (i32, i32) {
    %c0_i32 = arith.constant 0 : i32
    %c0_i32_0 = arith.constant 0 : i32
    %c0_i32_1 = arith.constant 0 : i32
    return %c0_i32, %c0_i32_0 : i32, i32
  }
  func.func @transform_7(%arg0: i32) -> (i32, i32) {
    %c0_i32 = arith.constant 0 : i32
    %c0_i32_0 = arith.constant 0 : i32
    %c0_i32_1 = arith.constant 0 : i32
    return %c0_i32, %c0_i32_0 : i32, i32
  }
  func.func @transform_8(%arg0: i32) -> (i32, i32) {
    %c0_i32 = arith.constant 0 : i32
    %c0_i32_0 = arith.constant 0 : i32
    %c0_i32_1 = arith.constant 0 : i32
    return %c0_i32, %c0_i32_0 : i32, i32
  }
  func.func @transform_9(%arg0: i32) -> (i32, i32) {
    %c0_i32 = arith.constant 0 : i32
    %c0_i32_0 = arith.constant 0 : i32
    %c0_i32_1 = arith.constant 0 : i32
    return %c0_i32, %c0_i32_0 : i32, i32
  }
  func.func @transform_10(%arg0: i32) -> (i32, i32, i32) {
    %c0_i32 = arith.constant 0 : i32
    %c0_i32_0 = arith.constant 0 : i32
    %c0_i32_1 = arith.constant 0 : i32
    %c0_i32_2 = arith.constant 0 : i32
    return %c0_i32, %c0_i32_0, %c0_i32_1 : i32, i32, i32
  }
  func.func @transform_11(%arg0: i32) -> (i32, i32, i32) {
    %c0_i32 = arith.constant 0 : i32
    %c0_i32_0 = arith.constant 0 : i32
    %c0_i32_1 = arith.constant 0 : i32
    %c0_i32_2 = arith.constant 0 : i32
    return %c0_i32, %c0_i32_0, %c0_i32_1 : i32, i32, i32
  }
  func.func @transform_12(%arg0: i32) -> (i32, i32) {
    %c0_i32 = arith.constant 0 : i32
    %c0_i32_0 = arith.constant 0 : i32
    %c0_i32_1 = arith.constant 0 : i32
    return %c0_i32, %c0_i32_0 : i32, i32
  }
  func.func @transform_13(%arg0: i32) -> (i32, i32) {
    %c0_i32 = arith.constant 0 : i32
    %c0_i32_0 = arith.constant 0 : i32
    %c0_i32_1 = arith.constant 0 : i32
    return %c0_i32, %c0_i32_0 : i32, i32
  }
  func.func @transform_14(%arg0: i32) -> (i32, i32) {
    %c0_i32 = arith.constant 0 : i32
    %c0_i32_0 = arith.constant 0 : i32
    %c0_i32_1 = arith.constant 0 : i32
    return %c0_i32, %c0_i32_0 : i32, i32
  }
  func.func @transform_15(%arg0: i32) -> (i32, i32) {
    %c0_i32 = arith.constant 0 : i32
    %c0_i32_0 = arith.constant 0 : i32
    return %arg0, %c0_i32 : i32, i32
  }
  func.func @transform_16(%arg0: i32) -> (i32, i32) {
    %c0_i32 = arith.constant 0 : i32
    %c0_i32_0 = arith.constant 0 : i32
    return %arg0, %c0_i32 : i32, i32
  }
}

</mosaic_0001>

<bundles_post_ra>
// kernel: encoder_forward.1
= control target key start
LH: loop header
LB: loop body
LE: loop exit
PB: predicated region body
PF: predicated region fallthrough
CT: control target
= control target key end

     0   :  { %s2057_s0 = inlined_call_operand.vmem [shape: f32[8,16], index: 0, kind: input, shape index: {}]   ;;  %s2058_s1 = inlined_call_operand.vmem [shape: f32[8,1], index: 1, kind: input, shape index: {}]   ;;  %s2059_s2 = inlined_call_operand.vmem [shape: f32[8,1], index: 2, kind: input, shape index: {}]   ;;  %s2060_s3 = inlined_call_operand.vmem [shape: f32[48,16], index: 3, kind: input, shape index: {}]   ;;  %s2061_s4 = inlined_call_operand.vmem [shape: f32[48,16], index: 4, kind: input, shape index: {}]   ;;  %s2062_s5 = inlined_call_operand.vmem [shape: f32[1,16], index: 5, kind: input, shape index: {}]   ;;  %s2063_s6 = inlined_call_operand.vmem [shape: f32[96,32], index: 6, kind: input, shape index: {}]   ;;  %s2064_s7 = inlined_call_operand.vmem [shape: f32[1,32], index: 7, kind: input, shape index: {}]   ;;  %s2065_s8 = inlined_call_operand.vmem [shape: f32[96,32], index: 8, kind: input, shape index: {}]   ;;  %s2066_s9 = inlined_call_operand.vmem [shape: f32[1,32], index: 9, kind: input, shape index: {}]   ;;  %s2067_s10 = inlined_call_operand.vmem [shape: f32[2,96,8], index: 10, kind: input, shape index: {}]   ;;  %s2068_s11 = inlined_call_operand.vmem [shape: f32[2,8,32], index: 11, kind: input, shape index: {}]   ;;  %s2069_s12 = inlined_call_operand.vmem [shape: f32[32,16], index: 12, kind: input, shape index: {}]   ;;  %s2070_s13 = inlined_call_operand.vmem [shape: f32[1,16], index: 13, kind: input, shape index: {}]   ;;  %s2071_s14 = inlined_call_operand.vmem [shape: f32[32,4], index: 14, kind: input, shape index: {}]   ;;  %s2072_s15 = inlined_call_operand.vmem [shape: f32[64,16], index: 15, kind: output, shape index: {0}]   ;;  %s2073_s16 = inlined_call_operand.hbm [shape: f32[8,16], index: 16, kind: output, shape index: {1}]  }
   0x1   :  { %2074 = sst [smem:[#allocation5_spill]] %s2057_s0 }
   0x2   :  { %v54_v0 = vld [vmem:[%s2059_s2] sm:$0xff]  ;;  %s2075_s25 = sld [smem:[#allocation5_spill]]  ;;  %v1575_v2 = vmov 0   ;;  %s1576_s26 = smov 16  }
   0x3   :  { %1550 = vset.pattern.permute.xlu0 %v1575_v2 }
   0x8   :  { %v55_v1 = vld [vmem:[%s2075_s25] sm:$0xff] }
   0x9   :  { %77 = vrot.lane.b32.xlu1 %v55_v1, %s1576_s26 }
   0xa   :  { %22 = vsyncpa [#allocation3], 0  ;;  %73 = vperm.xlu0 %1550, %v54_v0   ;;  %v53_v3 = vld [vmem:[%s2058_s1] sm:$0xff]  ;;  %v89_v5 = vld [vmem:[%s2060_s3 + $0x8] sm:$0xff]  ;;  %v1577_v7 = vmov 0.0|0.0   ;;  %vm1578_vm0 = vmmov 0  }
   0xb   :  { %v88_v4 = vld [vmem:[%s2060_s3] sm:$0xff]  ;;  %1446 = vmatprep.subr.bf16.mxu0 %v1577_v7  ;;  %1455 = vmatprep.subr.bf16.mxu1 %v1577_v7  ;;  %v177_v9 = vld [vmem:[%s2061_s4 + $0x8] sm:$0xff]  ;;  %v90_v10 = vld [vmem:[%s2060_s3 + $0x10] sm:$0xff]  ;;  %v1579_v23 = vmov 0.0   ;;  %v67_v24 = vrot.slane %v55_v1, 1  ;;  %vm69_vm1 = vcmask 1046528  }
   0xc   :  { %v176_v6 = vld [vmem:[%s2061_s4] sm:$0xff]  ;;  %v1447_v8 = vpack.c.bf16 %v89_v5, %v88_v4  ;;  %v91_v11 = vld [vmem:[%s2060_s3 + $0x18] sm:$0xff]  ;;  %v178_v13 = vld [vmem:[%s2061_s4 + $0x10] sm:$0xff]  ;;  %1283 = vmatprep.mubr.msk.f32.mxu0 %vm1578_vm0, %v1579_v23  ;;  %1298 = vmatprep.mubr.msk.f32.mxu1 %vm1578_vm0, %v1579_v23  ;;  %v57_v28 = vrot.slane %v55_v1, 7  ;;  %vm59_vm2 = vcmask 1040384   ;;  %vm84_vm3 = vcmask 130048  }
   0xd   :  { %v1456_v12 = vpack.c.bf16 %v177_v9, %v176_v6  ;;  %v179_v14 = vld [vmem:[%s2061_s4 + $0x18] sm:$0xff]  ;;  %v1450_v15 = vpack.c.bf16 %v91_v11, %v90_v10  ;;  %v92_v17 = vld [vmem:[%s2060_s3 + $0x20] sm:$0xff]  ;;  %v93_v18 = vld [vmem:[%s2060_s3 + $0x28] sm:$0xff]  ;;  %v70_v25 = vsel %vm69_vm1, %v67_v24, 0.0  ;;  %s1580_s3 = smov 32   ;;  %vm86_vm4 = vcmask 261120  }
   0xe   :  { %63 = vperm.xlu0 %1550, %v53_v3   ;;  %1448 = vmatpush3.bf16.msra.mxu0 %v1447_v8  ;;  %v1459_v16 = vpack.c.bf16 %v179_v14, %v178_v13  ;;  %v180_v19 = vld [vmem:[%s2061_s4 + $0x20] sm:$0xff]  ;;  %v181_v20 = vld [vmem:[%s2061_s4 + $0x28] sm:$0xff]  ;;  %v1453_v21 = vpack.c.bf16 %v93_v18, %v92_v17  ;;  %v60_v29 = vsel %vm59_vm2, 0.0, %v57_v28  ;;  %vm101_vm5 = vcmask 392192   ;;  %v279_v39 = vld [vmem:[%s2063_s6 + $0x10] sm:$0xff]  ;;  %s1581_s27 = smov 64  }
   0xf   :  { %1457 = vmatpush3.bf16.msra.mxu1 %v1456_v12  ;;  %1449 = vmatprep.subr.bf16.mxu0 %v1577_v7  ;;  %v1462_v22 = vpack.c.bf16 %v181_v20, %v180_v19  ;;  %v1150_v36 = vld [vmem:[%s2062_s5] ss:$0 sm:$0xff]  ;;  %v278_v38 = vld [vmem:[%s2063_s6 + $0x8] sm:$0xff]  ;;  %v280_v41 = vld [vmem:[%s2063_s6 + $0x18] sm:$0xff]  ;;  %vm275_vm6 = vcmask 523264   ;;  %vm296_vm7 = vcmask 785408  }
  0x10   :  { %1458 = vmatprep.subr.bf16.mxu1 %v1577_v7  ;;  %v277_v37 = vld [vmem:[%s2063_s6] sm:$0xff]  ;;  %v1468_v48 = vpack.c.bf16 %v280_v41, %v279_v39  ;;  %v282_v50 = vld [vmem:[%s2063_s6 + $0x28] sm:$0xff]  ;;  %v283_v53 = vld [vmem:[%s2063_s6 + $0x30] sm:$0xff]  ;;  %vm587_vm8 = vcmask 64512   ;;  %vm934_vm9 = vcmask 31744   ;;  %vm947_vm10 = vcmask 1043456  }
  0x11   :  { %v1465_v40 = vpack.c.bf16 %v278_v38, %v277_v37  ;;  %v281_v49 = vld [vmem:[%s2063_s6 + $0x20] sm:$0xff]  ;;  %v284_v54 = vld [vmem:[%s2063_s6 + $0x38] sm:$0xff]  ;;  %v286_v57 = vld [vmem:[%s2063_s6 + $0x48] sm:$0xff] }
  0x12   :  { %1451 = vmatpush3.bf16.msra.mxu0 %v1450_v15  ;;  %v1471_v52 = vpack.c.bf16 %v282_v50, %v281_v49  ;;  %v1474_v55 = vpack.c.bf16 %v284_v54, %v283_v53  ;;  %v285_v56 = vld [vmem:[%s2063_s6 + $0x40] sm:$0xff]  ;;  %v287_v59 = vld [vmem:[%s2063_s6 + $0x50] sm:$0xff]  ;;  %v288_v60 = vld [vmem:[%s2063_s6 + $0x58] sm:$0xff] }
  0x13   :  { %1460 = vmatpush3.bf16.msra.mxu1 %v1459_v16  ;;  %1452 = vmatprep.subr.bf16.mxu0 %v1577_v7  ;;  %v1477_v58 = vpack.c.bf16 %v286_v57, %v285_v56  ;;  %v1480_v61 = vpack.c.bf16 %v288_v60, %v287_v59  ;;  %v389_v12 = vld [vmem:[%s2065_s8] sm:$0xff]  ;;  %v390_v13 = vld [vmem:[%s2065_s8 + $0x8] sm:$0xff]  ;;  %v391_v14 = vld [vmem:[%s2065_s8 + $0x10] sm:$0xff] }
  0x14   :  { %1461 = vmatprep.subr.bf16.mxu1 %v1577_v7  ;;  %v1483_v15 = vpack.c.bf16 %v390_v13, %v389_v12  ;;  %v392_v16 = vld [vmem:[%s2065_s8 + $0x18] sm:$0xff]  ;;  %v393_v18 = vld [vmem:[%s2065_s8 + $0x20] sm:$0xff]  ;;  %v394_v19 = vld [vmem:[%s2065_s8 + $0x28] sm:$0xff] }
  0x15   :  { %v1486_v17 = vpack.c.bf16 %v392_v16, %v391_v14  ;;  %v1489_v20 = vpack.c.bf16 %v394_v19, %v393_v18  ;;  %v501_v49 = vld [vmem:[%s2067_s10 + $0x8] sm:$0xff]  ;;  %v502_v50 = vld [vmem:[%s2067_s10 + $0x10] sm:$0xff]  ;;  %v504_v54 = vld [vmem:[%s2067_s10 + $0x20] sm:$0xff] }
  0x16   :  { %1454 = vmatpush3.bf16.msra.mxu0 %v1453_v21  ;;  %v395_v21 = vld [vmem:[%s2065_s8 + $0x30] sm:$0xff]  ;;  %v508_v60 = vld [vmem:[%s2067_s10 + $0x40] sm:$0xff] }
  0x17   :  { %1463 = vmatpush3.bf16.msra.mxu1 %v1462_v22  ;;  %1464 = vmatprep.subr.bf16.mxu0 %v1577_v7  ;;  %v396_v22 = vld [vmem:[%s2065_s8 + $0x38] sm:$0xff]  ;;  %v506_v57 = vld [vmem:[%s2067_s10 + $0x30] sm:$0xff]  ;;  %v586_v18 = vld [vmem:[%s2068_s11] sm:$0xff] }
  0x18   :  { %1482 = vmatprep.subr.bf16.mxu1 %v1577_v7  ;;  %v1492_v24 = vpack.c.bf16 %v396_v22, %v395_v21  ;;  %v1159_v22 = vld [vmem:[%s2067_s10 + $0x60] sm:$0xff] }
  0x7b   :  { %v78_v31 = vpop.permute.xlu1 %77 }
  0x89   :  { %v1727_v26 = vpop.permute.xlu0 %73 }
  0x8a   :  { %v76_v27 = vmul.f32 %v1727_v26, %v70_v25  ;;  %v397_v25 = vld [vmem:[%s2065_s8 + $0x40] sm:$0xff] }
  0x8c   :  { %81 = vrot.lane.b32.xlu1 %v76_v27, %s1580_s3  ;;  %v398_v27 = vld [vmem:[%s2065_s8 + $0x48] sm:$0xff] }
  0x8d   :  { %v1732_v30 = vpop.permute.xlu0 %63  ;;  %v1495_v28 = vpack.c.bf16 %v398_v27, %v397_v25  ;;  %v1161_v25 = vld [vmem:[%s2067_s10 + $0x70] sm:$0xff] }
  0x8e   :  { %v66_v32 = vmul.f32 %v1732_v30, %v60_v29  ;;  %v399_v29 = vld [vmem:[%s2065_s8 + $0x50] sm:$0xff] }
  0x90   :  { %v85_v33 = vsel %vm84_vm3, %v66_v32, %v78_v31  ;;  %v400_v31 = vld [vmem:[%s2065_s8 + $0x58] sm:$0xff]  ;;  %s1582_s8 = smov [#allocation2]  }
  0x91   :  { %v1498_v32 = vpack.c.bf16 %v400_v31, %v399_v29  ;;  %v1163_v31 = vld [vmem:[%s2067_s10 + $0x80] sm:$0xff]  ;;  %s1140_s17 = sshll.u32 %s1582_s8, 4  ;;  %s1141_s17 = int_to_ptr.vmem [resolvable:$true] %s1140_s17 }
  0x92   :  { %s1551_s18 = scalar_lea.vmem %s1141_s17, 128  ;;  %p1556_p1 = scmp.lt.s32.totalorder %s1141_s17, %s1141_s17 }
  0x93   :  { %p1552_p0 = scmp.ne.s32.totalorder %s1141_s17, %s1551_s18  ;;  %p1557_p2 = scmp.lt.s32.totalorder %s1551_s18, %s1551_s18 }
  0x95   :  { %p1558_p3 = por %p1557_p2, %p1556_p1 }
  0x97   :  { %p1559_p4 = pnand %p1558_p3, %p1552_p0 }
  0xfe   :  { %v82_v34 = vpop.permute.xlu1 %81 }
  0xff   :  { %v87_v35 = vsel %vm86_vm4, %v85_v33, %v82_v34  ;;  %v1153_v33 = vld [vmem:[%s2064_s7] ss:$0 sm:$0xff] }
 0x100   :  { %1284 = vmatmul.mubr.msk.f32.vlgmr.msra.gmra.mrb[0].mxu0 %vm101_vm5, %v87_v35  ;;  %1299 = vmatmul.mubr.msk.f32.vlgmr.msra.gmra.mrb[0].mxu1 %vm101_vm5, %v87_v35 }
 0x101   :  { %1325 = vmatprep.mubr.msk.f32.mxu0 %vm1578_vm0, %v1579_v23  ;;  %1352 = vmatprep.mubr.msk.f32.mxu1 %vm1578_vm0, %v1579_v23 }
 0x102   :  { %1466 = vmatpush3.bf16.msra.mxu0 %v1465_v40  ;;  %1484 = vmatpush3.bf16.msra.mxu1 %v1483_v15 }
 0x103   :  { %1467 = vmatprep.subr.bf16.mxu0 %v1577_v7  ;;  %1485 = vmatprep.subr.bf16.mxu1 %v1577_v7 }
 0x106   :  { %1469 = vmatpush3.bf16.msra.mxu0 %v1468_v48  ;;  %1487 = vmatpush3.bf16.msra.mxu1 %v1486_v17  ;;  %v500_v48 = vld [vmem:[%s2067_s10] sm:$0xff] }
 0x107   :  { %1470 = vmatprep.subr.bf16.mxu0 %v1577_v7  ;;  %1488 = vmatprep.subr.bf16.mxu1 %v1577_v7 }
 0x10a   :  { %1472 = vmatpush3.bf16.msra.mxu0 %v1471_v52  ;;  %1490 = vmatpush3.bf16.msra.mxu1 %v1489_v20  ;;  %v503_v52 = vld [vmem:[%s2067_s10 + $0x18] sm:$0xff] }
 0x10b   :  { %1473 = vmatprep.subr.bf16.mxu0 %v1577_v7  ;;  %1491 = vmatprep.subr.bf16.mxu1 %v1577_v7  ;;  %v1504_v53 = vpack.c.bf16 %v503_v52, %v502_v50 }
 0x10e   :  { %1475 = vmatpush3.bf16.msra.mxu0 %v1474_v55  ;;  %1493 = vmatpush3.bf16.msra.mxu1 %v1492_v24  ;;  %v505_v55 = vld [vmem:[%s2067_s10 + $0x28] sm:$0xff] }
 0x10f   :  { %1476 = vmatprep.subr.bf16.mxu0 %v1577_v7  ;;  %1494 = vmatprep.subr.bf16.mxu1 %v1577_v7  ;;  %v1507_v56 = vpack.c.bf16 %v505_v55, %v504_v54  ;;  %v1160_v24 = vld [vmem:[%s2067_s10 + $0x68] sm:$0xff] }
 0x110   :  { %v1519_v27 = vpack.c.bf16 %v1160_v24, %v1159_v22 }
 0x112   :  { %1478 = vmatpush3.bf16.msra.mxu0 %v1477_v58  ;;  %1496 = vmatpush3.bf16.msra.mxu1 %v1495_v28  ;;  %v507_v58 = vld [vmem:[%s2067_s10 + $0x38] sm:$0xff] }
 0x113   :  { %1479 = vmatprep.subr.bf16.mxu0 %v1577_v7  ;;  %1497 = vmatprep.subr.bf16.mxu1 %v1577_v7  ;;  %v1510_v59 = vpack.c.bf16 %v507_v58, %v506_v57  ;;  %v1162_v28 = vld [vmem:[%s2067_s10 + $0x78] sm:$0xff]  ;;  %v845_v57 = vld [vmem:[%s2069_s12] sm:$0xff] }
 0x114   :  { %v1522_v29 = vpack.c.bf16 %v1162_v28, %v1161_v25 }
 0x116   :  { %1481 = vmatpush3.bf16.msra.mxu0 %v1480_v61  ;;  %1499 = vmatpush3.bf16.msra.mxu1 %v1498_v32  ;;  %v509_v61 = vld [vmem:[%s2067_s10 + $0x48] sm:$0xff] }
 0x117   :  { %1500 = vmatprep.subr.bf16.mxu0 %v1577_v7  ;;  %1382 = vmatprep.subr.mxu1 %v1579_v23  ;;  %v1164_v32 = vld [vmem:[%s2067_s10 + $0x88] sm:$0xff] }
 0x1d3   :  { %v171_v42 = vpop.f32.mrb[0].mxu0  ;;  %v248_v43 = vpop.f32.mrb[0].mxu1 }
 0x1d4   :  { %v172_v44 = vadd.f32 %v1150_v36, %v171_v42  ;;  %v249_v45 = vadd.f32 %v1150_v36, %v248_v43  ;;  %v1285_v46 = vpop.f32.mrb[1].mxu0  ;;  %v1300_v47 = vpop.f32.mrb[1].mxu1 }
 0x1d6   :  { %v252_v51 = vmax.f32 %v249_v45, 0.0  ;;  %v175_v62 = vmax.f32 %v172_v44, 0.0 }
 0x1d8   :  { %254 = vrot.lane.b32.xlu0 %v252_v51, %s1576_s26  ;;  %v1501_v51 = vpack.c.bf16 %v501_v49, %v500_v48 }
 0x24a   :  { %v255_v63 = vpop.permute.xlu0 %254 }
 0x24b   :  { %v257_v0 = vsel %vm84_vm3, %v175_v62, %v255_v63  ;;  %v1513_v62 = vpack.c.bf16 %v509_v61, %v508_v60  ;;  %v510_v63 = vld [vmem:[%s2067_s10 + $0x50] sm:$0xff] }
 0x24c   :  { %267 = vrot.lane.b32.xlu1 %v257_v0, %s1580_s3  ;;  %v263_v1 = vrot.slane %v257_v0, 1  ;;  %v259_v4 = vrot.slane %v257_v0, 7  ;;  %v511_v0 = vld [vmem:[%s2067_s10 + $0x58] sm:$0xff]  ;;  %v847_v61 = vld [vmem:[%s2069_s12 + $0x10] sm:$0xff] }
 0x24e   :  { %v265_v2 = vsel %vm69_vm1, %v263_v1, 0.0  ;;  %v261_v5 = vsel %vm59_vm2, 0.0, %v259_v4  ;;  %v1516_v1 = vpack.c.bf16 %v511_v0, %v510_v63 }
 0x24f   :  { %v266_v3 = vmul.f32 %v265_v2, %v1727_v26  ;;  %v262_v8 = vmul.f32 %v261_v5, %v1732_v30  ;;  %v1155_v2 = vld [vmem:[%s2066_s9] ss:$0 sm:$0xff] }
 0x251   :  { %271 = vrot.lane.b32.xlu0 %v266_v3, %s1581_s27 }
 0x2be   :  { %v268_v6 = vpop.permute.xlu1 %267 }
 0x2bf   :  { %v274_v9 = vsel %vm86_vm4, %v262_v8, %v268_v6 }
 0x2c3   :  { %v272_v10 = vpop.permute.xlu0 %271 }
 0x2c4   :  { %v276_v11 = vsel %vm275_vm6, %v274_v9, %v272_v10 }
 0x2c5   :  { %1326 = vmatmul.mubr.msk.f32.vlgmr.msra.gmra.mrb[2].mxu0 %vm296_vm7, %v276_v11 }
 0x2c6   :  { %1379 = vmatprep.mubr.msk.f32.mxu0 %vm1578_vm0, %v1579_v23  ;;  %1502 = vmatpush3.bf16.msra.mxu0 %v1501_v51 }
 0x2c7   :  { %1503 = vmatprep.subr.bf16.mxu0 %v1577_v7 }
 0x2ca   :  { %1505 = vmatpush3.bf16.msra.mxu0 %v1504_v53 }
 0x2cb   :  { %1506 = vmatprep.subr.bf16.mxu0 %v1577_v7 }
 0x2ce   :  { %1508 = vmatpush3.bf16.msra.mxu0 %v1507_v56 }
 0x2cf   :  { %1509 = vmatprep.subr.bf16.mxu0 %v1577_v7 }
 0x2d2   :  { %1511 = vmatpush3.bf16.msra.mxu0 %v1510_v59 }
 0x2d3   :  { %1512 = vmatprep.subr.bf16.mxu0 %v1577_v7 }
 0x2d6   :  { %1514 = vmatpush3.bf16.msra.mxu0 %v1513_v62  ;;  %v848_v62 = vld [vmem:[%s2069_s12 + $0x18] sm:$0xff] }
 0x2d7   :  { %1515 = vmatprep.subr.bf16.mxu0 %v1577_v7  ;;  %v1540_v63 = vpack.c.bf16 %v848_v62, %v847_v61 }
 0x2da   :  { %1517 = vmatpush3.bf16.msra.mxu0 %v1516_v1 }
 0x2db   :  { %1536 = vmatprep.subr.bf16.mxu0 %v1577_v7 }
 0x398   :  { %v366_v34 = vpop.f32.mrb[2].mxu0 }
 0x399   :  { %v367_v35 = vadd.f32 %v1153_v33, %v366_v34  ;;  %v1327_v36 = vpop.f32.mrb[3].mxu0  ;;  %v1525_v33 = vpack.c.bf16 %v1164_v32, %v1163_v31  ;;  %v1165_v34 = vld [vmem:[%s2067_s10 + $0x90] sm:$0xff] }
 0x39b   :  { %v370_v37 = vmax.f32 %v367_v35, 0.0  ;;  %v1166_v35 = vld [vmem:[%s2067_s10 + $0x98] sm:$0xff] }
 0x39c   :  { %v1528_v36 = vpack.c.bf16 %v1166_v35, %v1165_v34 }
 0x39d   :  { %v376_v38 = vrot.slane %v370_v37, 1  ;;  %380 = vrot.lane.b32.xlu1 %v370_v37, %s1580_s3  ;;  %v372_v41 = vrot.slane %v370_v37, 7  ;;  %v1167_v37 = vld [vmem:[%s2067_s10 + $0xa0] sm:$0xff] }
 0x39f   :  { %v378_v39 = vsel %vm69_vm1, %v376_v38, 0.0  ;;  %v374_v42 = vsel %vm59_vm2, 0.0, %v372_v41  ;;  %v1168_v38 = vld [vmem:[%s2067_s10 + $0xa8] sm:$0xff]  ;;  %v1170_v41 = vld [vmem:[%s2067_s10 + $0xb8] sm:$0xff] }
 0x3a0   :  { %v379_v40 = vmul.f32 %v378_v39, %v1727_v26  ;;  %v375_v44 = vmul.f32 %v374_v42, %v1732_v30  ;;  %v1531_v39 = vpack.c.bf16 %v1168_v38, %v1167_v37 }
 0x3a2   :  { %384 = vrot.lane.b32.xlu0 %v379_v40, %s1581_s27  ;;  %v1169_v40 = vld [vmem:[%s2067_s10 + $0xb0] sm:$0xff] }
 0x3a3   :  { %v1534_v42 = vpack.c.bf16 %v1170_v41, %v1169_v40 }
 0x40f   :  { %v381_v43 = vpop.permute.xlu1 %380 }
 0x410   :  { %v387_v45 = vsel %vm86_vm4, %v375_v44, %v381_v43 }
 0x414   :  { %v385_v46 = vpop.permute.xlu0 %384 }
 0x415   :  { %v388_v47 = vsel %vm275_vm6, %v387_v45, %v385_v46 }
 0x416   :  { %1353 = vmatmul.mubr.msk.f32.vlgmr.msra.gmra.mrb[2].mxu1 %vm296_vm7, %v388_v47 }
 0x417   :  { %1384 = vmatprep.mubr.msk.f32.mxu1 %vm1578_vm0, %v1579_v23  ;;  %1383 = vmatpush3.msra.mxu1 %v586_v18 }
 0x418   :  { %1518 = vmatprep.subr.bf16.mxu1 %v1577_v7 }
 0x4e9   :  { %v477_v3 = vpop.f32.mrb[2].mxu1 }
 0x4ea   :  { %v478_v4 = vadd.f32 %v1155_v2, %v477_v3  ;;  %v1354_v5 = vpop.f32.mrb[3].mxu1 }
 0x4ec   :  { %v481_v6 = vmax.f32 %v478_v4, 0.0 }
 0x4ee   :  { %491 = vrot.lane.b32.xlu1 %v481_v6, %s1580_s3  ;;  %v487_v8 = vrot.slane %v481_v6, 1  ;;  %v483_v11 = vrot.slane %v481_v6, 7 }
 0x4f0   :  { %v489_v9 = vsel %vm69_vm1, %v487_v8, 0.0  ;;  %v485_v12 = vsel %vm59_vm2, 0.0, %v483_v11  ;;  %v932_v11 = vld [vmem:[%s2071_s14 + $0x10] sm:$0xff] }
 0x4f1   :  { %v490_v10 = vmul.f32 %v489_v9, %v1727_v26  ;;  %v486_v14 = vmul.f32 %v485_v12, %v1732_v30  ;;  %v931_v9 = vld [vmem:[%s2071_s14 + $0x8] sm:$0xff]  ;;  %v933_v12 = vld [vmem:[%s2071_s14 + $0x18] sm:$0xff] }
 0x4f3   :  { %495 = vrot.lane.b32.xlu0 %v490_v10, %s1581_s27 }
 0x560   :  { %v492_v13 = vpop.permute.xlu1 %491 }
 0x561   :  { %v498_v15 = vsel %vm86_vm4, %v486_v14, %v492_v13 }
 0x565   :  { %v496_v16 = vpop.permute.xlu0 %495 }
 0x566   :  { %v499_v17 = vsel %vm275_vm6, %v498_v15, %v496_v16 }
 0x567   :  { %1380 = vmatmul.mubr.msk.f32.vlgmr.msra.gmra.mrb[4].mxu0 %vm296_vm7, %v499_v17 }
 0x568   :  { %1427 = vmatprep.mubr.msk.f32.mxu0 %vm1578_vm0, %v1579_v23 }
 0x63a   :  { %v581_v19 = vpop.f32.mrb[4].mxu0 }
 0x63b   :  { %v585_v20 = vmax.f32 %v581_v19, 0.0  ;;  %v1381_v21 = vpop.f32.mrb[5].mxu0 }
 0x63d   :  { %1385 = vmatmul.mubr.msk.f32.vlgmr.msra.gmra.mrb[4].mxu1 %vm587_vm8, %v585_v20 }
 0x63e   :  { %1411 = vmatprep.mubr.msk.f32.mxu1 %vm1578_vm0, %v1579_v23  ;;  %1520 = vmatpush3.bf16.msra.mxu1 %v1519_v27 }
 0x63f   :  { %1521 = vmatprep.subr.bf16.mxu1 %v1577_v7 }
 0x642   :  { %1523 = vmatpush3.bf16.msra.mxu1 %v1522_v29 }
 0x643   :  { %1524 = vmatprep.subr.bf16.mxu1 %v1577_v7 }
 0x646   :  { %1526 = vmatpush3.bf16.msra.mxu1 %v1525_v33 }
 0x647   :  { %1527 = vmatprep.subr.bf16.mxu1 %v1577_v7 }
 0x64a   :  { %1529 = vmatpush3.bf16.msra.mxu1 %v1528_v36 }
 0x64b   :  { %1530 = vmatprep.subr.bf16.mxu1 %v1577_v7 }
 0x64e   :  { %1532 = vmatpush3.bf16.msra.mxu1 %v1531_v39 }
 0x64f   :  { %1533 = vmatprep.subr.bf16.mxu1 %v1577_v7 }
 0x652   :  { %1535 = vmatpush3.bf16.msra.mxu1 %v1534_v42 }
 0x653   :  { %1414 = vmatprep.subr.mxu1 %v1579_v23 }
 0x710   :  { %v657_v43 = vpop.f32.mrb[4].mxu1 }
 0x711   :  { %v661_v44 = vadd.f32 %v657_v43, %v478_v4  ;;  %v1386_v45 = vpop.f32.mrb[5].mxu1  ;;  %v1174_v4 = vld [vmem:[%s2070_s13] ss:$0 sm:$0xff] }
 0x713   :  { %v662_v46 = vmax.f32 %v661_v44, 0.0 }
 0x715   :  { %672 = vrot.lane.b32.xlu1 %v662_v46, %s1580_s3  ;;  %v668_v47 = vrot.slane %v662_v46, 1  ;;  %v664_v50 = vrot.slane %v662_v46, 7 }
 0x717   :  { %v670_v48 = vsel %vm69_vm1, %v668_v47, 0.0  ;;  %v666_v51 = vsel %vm59_vm2, 0.0, %v664_v50 }
 0x718   :  { %v671_v49 = vmul.f32 %v670_v48, %v1727_v26  ;;  %v667_v53 = vmul.f32 %v666_v51, %v1732_v30  ;;  %v1172_v26 = vld [vmem:[%s2068_s11 + $0x8] sm:$0xff] }
 0x719   :  { %v846_v30 = vld [vmem:[%s2069_s12 + $0x8] sm:$0xff] }
 0x71a   :  { %676 = vrot.lane.b32.xlu0 %v671_v49, %s1581_s27  ;;  %v1537_v58 = vpack.c.bf16 %v846_v30, %v845_v57 }
 0x71c   :  { %1538 = vmatpush3.bf16.msra.mxu0 %v1537_v58 }
 0x71d   :  { %1539 = vmatprep.subr.bf16.mxu0 %v1577_v7  ;;  %v930_v7 = vld [vmem:[%s2071_s14] sm:$0xff] }
 0x720   :  { %1541 = vmatpush3.bf16.msra.mxu0 %v1540_v63 }
 0x787   :  { %v673_v52 = vpop.permute.xlu1 %672 }
 0x788   :  { %v679_v54 = vsel %vm86_vm4, %v667_v53, %v673_v52 }
 0x78c   :  { %v677_v55 = vpop.permute.xlu0 %676 }
 0x78d   :  { %v680_v56 = vsel %vm275_vm6, %v679_v54, %v677_v55 }
 0x78e   :  { %1412 = vmatmul.mubr.msk.f32.vlgmr.msra.gmra.mrb[6].mxu1 %vm296_vm7, %v680_v56 }
 0x78f   :  { %1416 = vmatprep.mubr.msk.f32.mxu1 %vm1578_vm0, %v1579_v23  ;;  %1415 = vmatpush3.msra.mxu1 %v1172_v26 }
 0x861   :  { %v763_v59 = vpop.f32.mrb[6].mxu1 }
 0x862   :  { %v767_v60 = vmax.f32 %v763_v59, 0.0  ;;  %v1413_v23 = vpop.f32.mrb[7].mxu1 }
 0x864   :  { %1417 = vmatmul.mubr.msk.f32.vlgmr.msra.gmra.mrb[8].mxu1 %vm587_vm8, %v767_v60 }
 0x865   :  { %1432 = vmatprep.mubr.msk.f32.mxu1 %vm934_vm9, %v930_v7 }
 0x937   :  { %v839_v0 = vpop.f32.mrb[8].mxu1 }
 0x938   :  { %v843_v1 = vadd.f32 %v839_v0, %v661_v44  ;;  %v1418_v2 = vpop.f32.mrb[9].mxu1 }
 0x93a   :  { %v844_v3 = vmax.f32 %v843_v1, 0.0 }
 0x93c   :  { %1428 = vmatmul.mubr.msk.f32.vlgmr.msra.gmra.mrb[6].mxu0 %vm86_vm4, %v844_v3 }
 0x93d   :  { %1440 = vmatprep.mubr.msk.f32.mxu0 %vm934_vm9, %v930_v7 }
 0xa0f   :  { %v925_v5 = vpop.f32.mrb[6].mxu0 }
 0xa10   :  { %v926_v6 = vadd.f32 %v1174_v4, %v925_v5  ;;  %v1429_v8 = vpop.f32.mrb[7].mxu0 }
 0xa12   :  { %929 = vst.msk [vmem:[#allocation2] sm:$0xff] %vm84_vm3, %v926_v6  ;;  %1430 = vmatprep.subr.msk.mxu1 %vm947_vm10, %v926_v6  ;;  %v1040_v10 = vrot.slane %v926_v6, 4 }
 0xa13   :  { %1431 = vmatpush3.msk.msra.mxu1 %vm947_vm10, %v926_v6 }
 0xa14   :  { %1438 = vmatprep.subr.msk.mxu0 %vm947_vm10, %v1040_v10  ;;  %1433 = vmatmul.mubr.msk.f32.vlgmr.msra.gmra.mrb[10].mxu1 %vm934_vm9, %v931_v9 }
 0xa15   :  { %1439 = vmatpush3.msk.msra.mxu0 %vm947_vm10, %v1040_v10  ;;  %1435 = vmatprep.mubr.msk.f32.mxu1 %vm934_vm9, %v932_v11 }
 0xa16   :  { %1441 = vmatmul.mubr.msk.f32.vlgmr.msra.gmra.mrb[8].mxu0 %vm934_vm9, %v931_v9 }
 0xa17   :  { %1443 = vmatprep.mubr.msk.f32.mxu0 %vm934_vm9, %v932_v11 }
 0xa18   :  { %1436 = vmatmul.mubr.msk.f32.gmra.mrb[12].mxu1 %vm934_vm9, %v933_v12 }
 0xa1a   :  { %1444 = vmatmul.mubr.msk.f32.gmra.mrb[10].mxu0 %vm934_vm9, %v933_v12 }
 0xa1b   :  { %1562 = shalt.err (!%p1559_p4)
}
 0xa1c   :  { %s1563_s9 = scalar_lea.hbm %s2073_s16, 128 }
 0xa1d   :  { %p1564_p5 = scmp.ne.s32.totalorder %s2073_s16, %s1563_s9  ;;  %p1567_p6 = scmp.lt.u32.totalorder %s1563_s9, %s2073_s16 }
 0xa1f   :  { %p1569_p7 = pnand %p1567_p6, %p1564_p5 }
 0xa21   :  { %1572 = shalt.err (!%p1569_p7)
}
 0xa22   :  { %1143 = dma.vmem_to_hbm [thread:$0]  %s1141_s17, 128, %s2073_s16, [#allocation3]  }
 0xae7   :  { %v1434_v13 = vpop.f32.mrb[10].mxu1 }
 0xae8   :  { %1037 = vst.msk [vmem:[%s2072_s15 + $0x8] sm:$0xff] %vm84_vm3, %v1434_v13  ;;  %v1017_v14 = vpop.f32.mrb[11].mxu1 }
 0xae9   :  { %v1442_v15 = vpop.f32.mrb[8].mxu0  ;;  %1036 = vst.msk [vmem:[%s2072_s15] sm:$0xff] %vm84_vm3, %v1017_v14 }
 0xaea   :  { %1129 = vst.msk [vmem:[%s2072_s15 + $0x28] sm:$0xff] %vm84_vm3, %v1442_v15  ;;  %v1109_v16 = vpop.f32.mrb[9].mxu0 }
 0xaeb   :  { %1128 = vst.msk [vmem:[%s2072_s15 + $0x20] sm:$0xff] %vm84_vm3, %v1109_v16  ;;  %v1437_v17 = vpop.f32.mrb[12].mxu1 }
 0xaec   :  { %1039 = vst.msk [vmem:[%s2072_s15 + $0x18] sm:$0xff] %vm84_vm3, %v1437_v17  ;;  %v1027_v18 = vpop.f32.mrb[13].mxu1 }
 0xaed   :  { %v1445_v19 = vpop.f32.mrb[10].mxu0  ;;  %1038 = vst.msk [vmem:[%s2072_s15 + $0x10] sm:$0xff] %vm84_vm3, %v1027_v18 }
 0xaee   :  { %1131 = vst.msk [vmem:[%s2072_s15 + $0x38] sm:$0xff] %vm84_vm3, %v1445_v19  ;;  %v1119_v20 = vpop.f32.mrb[11].mxu0 }
 0xaef   :  { %1130 = vst.msk [vmem:[%s2072_s15 + $0x30] sm:$0xff] %vm84_vm3, %v1119_v20 }
 0xaf0   :  { %1573 = dma.done.wait [#allocation3], 128  }
 0xaf1   :  { %1574 = vsyncadd [#allocation3], 4294967168 }
 0xaf2   :  { %1149 = vsyncpa [#allocation3], 1 }

</bundles_post_ra>
